<compile_context>
chip_gen: v7x
topology: tpu7x:2x2x1
jax: 0.10.0
libtpu: 0.0.40
codegen_flags: <defaults>
</compile_context>

<pallas_src>
import functools
import math

import jax
import jax.numpy as jnp
from jax.experimental import pallas as pl
from jax.experimental.pallas import tpu as pltpu

LANE = 128


def _round_up(x, m):
    return ((x + m - 1) // m) * m


# ----------------------------------------------------------------------------
# Fused MLP kernel: one batch tile goes through every layer in a single body.
# ----------------------------------------------------------------------------
def _mlp_kernel(x_ref, *refs, num_layers):
    """x_ref: (tb, K0p) bf16 activations tile.

    refs = (w0, b0, w1, b1, ..., w_{L-1}, b_{L-1}, o_ref)
      w_i : (K_ip, N_ip) bf16  (VMEM resident across the batch grid)
      b_i : (1, N_ip)    f32
      o_ref : (tb, N_lastp) f32
    """
    o_ref = refs[-1]
    h = x_ref[...]                                   # bf16, feeds the MXU directly
    for i in range(num_layers):
        w = refs[2 * i][...]
        b = refs[2 * i + 1][...]
        acc = jnp.dot(h, w, preferred_element_type=jnp.float32) + b
        if i < num_layers - 1:
            # ReLU, then carry the intermediate in bf16 (next dot consumes bf16).
            h = jnp.maximum(acc, 0.0).astype(jnp.bfloat16)
        else:
            h = acc
    o_ref[...] = h.astype(o_ref.dtype)


# ----------------------------------------------------------------------------
# Parameter init (mirrors the PyTorch module) and one-time prep (pad + bf16).
# ----------------------------------------------------------------------------
def init_params(key, input_size, layer_sizes, dtype=jnp.float32):
    """weights: xavier_uniform_, biases: nn.Linear default U(-1/sqrt(fan_in), +)."""
    params = []
    fan_in = input_size
    for fan_out in layer_sizes:
        key, kw, kb = jax.random.split(key, 3)
        a = math.sqrt(6.0 / (fan_in + fan_out))
        w = jax.random.uniform(kw, (fan_in, fan_out), dtype, minval=-a, maxval=a)
        bb = 1.0 / math.sqrt(fan_in)
        b = jax.random.uniform(kb, (fan_out,), dtype, minval=-bb, maxval=bb)
        params.append((w, b))
        fan_in = fan_out
    return params


def prepare_mlp_params(params, input_size):
    """Pad feature dims to multiples of 128, cast weights to bf16 (once),
    store biases as f32 (1, N) rows.  Zero padding preserves exact results.
    (On v7x, an fp8 weight cast here would further halve weight VMEM/DMA.)"""
    dims = [int(input_size)] + [int(w.shape[1]) for (w, _) in params]
    dims_p = [_round_up(d, LANE) for d in dims]
    ws, bs = [], []
    for i, (w, b) in enumerate(params):
        kp, np_ = dims_p[i], dims_p[i + 1]
        w_p = jnp.zeros((kp, np_), jnp.bfloat16)
        w_p = w_p.at[: w.shape[0], : w.shape[1]].set(w.astype(jnp.bfloat16))
        b_p = jnp.zeros((1, np_), jnp.float32)
        b_p = b_p.at[0, : b.shape[0]].set(b.astype(jnp.float32))
        ws.append(w_p)
        bs.append(b_p)
    return {"dims": tuple(dims), "dims_p": tuple(dims_p),
            "weights": ws, "biases": bs}


# ----------------------------------------------------------------------------
# Tiling / spec helpers.
# ----------------------------------------------------------------------------
def _const_block_spec(shape, single_buffer):
    """BlockSpec for a grid-invariant (weight/bias) operand.  When requested,
    ask for single-buffering: the block index never changes across the grid,
    so double-buffering it only doubles its VMEM footprint."""
    index_map = lambda i: (0, 0)
    if single_buffer:
        try:
            return pl.BlockSpec(shape, index_map, pipeline_mode=pl.Buffered(1))
        except Exception:
            pass  # older API: fall back to the default (double-buffered) spec
    return pl.BlockSpec(shape, index_map)


def _choose_batch_tiling(B, max_tb):
    """Pick (tb, Bp): minimize padded (wasted) rows first, then prefer >= 2
    grid steps so the 'parallel' batch axis can span both TensorCores on v7x,
    then prefer the largest tile (amortizes per-step overhead on v5e/v6e)."""
    Bp_min = _round_up(B, 16)
    cands = [t for t in (128, 256, 512) if t <= max_tb]
    if Bp_min < 128:
        cands.append(Bp_min)          # tiny batch: one full-extent tile
    if not cands:
        cands = [Bp_min]
    best = None
    for tb in cands:
        Bp = _round_up(Bp_min, tb)
        waste = Bp - B
        steps = Bp // tb
        score = (waste, 0 if steps >= 2 else 1, -tb)
        if best is None or score < best[0]:
            best = (score, tb, Bp)
    return best[1], best[2]


# ----------------------------------------------------------------------------
# Fused forward pass (single pallas_call).
# ----------------------------------------------------------------------------
def run_all_forward(x, prepared, *, max_tb=512):
    dims, dims_p = prepared["dims"], prepared["dims_p"]
    ws, bs = prepared["weights"], prepared["biases"]
    num_layers = len(ws)

    B, K0 = x.shape
    assert K0 == dims[0], f"expected input size {dims[0]}, got {K0}"
    K0p, n_out_p = dims_p[0], dims_p[-1]

    tb, Bp = _choose_batch_tiling(B, max_tb)

    # Single cheap bf16 pad (batch rows + input lanes).  The activation stream
    # into the kernel is bf16, halving the per-tile input DMA; the lane pad is
    # exact because the padded weight rows of layer 0 are zero.
    x_p = jnp.pad(x.astype(jnp.bfloat16), ((0, Bp - B), (0, K0p - K0)))

    flat_inputs = [x_p]
    for li in range(num_layers):
        flat_inputs += [ws[li], bs[li]]

    # Advisory cost hint for XLA scheduling around the custom call.
    weight_bytes = (sum(int(w.size) * 2 for w in ws)
                    + sum(int(b.size) * 4 for b in bs))
    flops = 2 * Bp * sum(dims_p[i] * dims_p[i + 1] for i in range(num_layers))
    cost = pl.CostEstimate(
        flops=flops, transcendentals=0,
        bytes_accessed=int(x_p.size) * 2 + Bp * n_out_p * 4 + weight_bytes)

    # VMEM budget from the actual chip (v5e/v6e: 128 MiB, v7x: 64 MiB per TC):
    # double-buffered activation tiles + (worst-case double-buffered) weights
    # + in-kernel intermediates, with headroom, clamped below capacity.
    try:
        vmem_cap = int(pltpu.get_tpu_info().vmem_capacity_bytes)
    except Exception:
        vmem_cap = 64 << 20
    act_bytes = 2 * (tb * K0p * 2 + tb * n_out_p * 4)
    scratch_bytes = tb * max(dims_p) * 6          # live h (bf16) + acc (f32)
    need = 2 * weight_bytes + act_bytes + scratch_bytes + (4 << 20)
    vmem_limit = int(min(max(need, 32 << 20), int(vmem_cap * 0.85)))

    kernel = functools.partial(_mlp_kernel, num_layers=num_layers)
    grid = (Bp // tb,)
    out_shape = jax.ShapeDtypeStruct((Bp, n_out_p), jnp.float32)
    out_spec = pl.BlockSpec((tb, n_out_p), lambda i: (i, 0))

    def build_and_call(single_buffer_weights):
        in_specs = [pl.BlockSpec((tb, K0p), lambda i: (i, 0))]
        for li in range(num_layers):
            kp, np_ = dims_p[li], dims_p[li + 1]
            in_specs.append(_const_block_spec((kp, np_), single_buffer_weights))
            in_specs.append(_const_block_spec((1, np_), single_buffer_weights))
        return pl.pallas_call(
            kernel,
            out_shape=out_shape,
            grid=grid,
            in_specs=in_specs,
            out_specs=out_spec,
            compiler_params=pltpu.CompilerParams(
                dimension_semantics=("parallel",),
                vmem_limit_bytes=vmem_limit),
            cost_estimate=cost,
        )(*flat_inputs)

    try:
        out_p = build_and_call(True)     # single-buffered resident weights
    except Exception:
        out_p = build_and_call(False)    # fallback: default double buffering

    # Drop batch padding and the lane padding of the final layer.
    return out_p[:B, : dims[-1]]


# ----------------------------------------------------------------------------
# Self-test at small shapes consistent with the module.
# ----------------------------------------------------------------------------
if __name__ == "__main__":
    # Original module uses input_size=2000, layers [1000, 1000, 1000, 1];
    # here: small shapes with the same structure.
    batch = 8
    input_size = 256
    layer_sizes = [128, 128, 128, 1]

    key = jax.random.PRNGKey(0)
    key, kx = jax.random.split(key)
    x = jax.random.normal(kx, (batch, input_size), dtype=jnp.float32)

    params = init_params(key, input_size, layer_sizes)
    prepared = prepare_mlp_params(params, input_size)     # pad + bf16 cast once

    out = run_all_forward(x, prepared)
    out = jax.block_until_ready(out)

    # Reference: plain JAX with the same math path (bf16 weights/activations
    # into the matmul, f32 accumulation, f32 bias, ReLU between layers).
    ref = x
    for i, (w, b) in enumerate(params):
        ref = jnp.dot(ref.astype(jnp.bfloat16), w.astype(jnp.bfloat16),
                      preferred_element_type=jnp.float32) + b
        if i < len(params) - 1:
            ref = jnp.maximum(ref, 0.0)

    assert out.shape == (batch, layer_sizes[-1])
    max_err = float(jnp.max(jnp.abs(out - ref)))
    assert jnp.allclose(out, ref, atol=1e-2, rtol=1e-2), max_err

    print("KERNEL_OK")
</pallas_src>

<mosaic_0001>
module attributes {stable_mosaic.version = 11 : i64} {
  func.func @_mlp_kernel(%arg0: i32, %arg1: memref<16x256xbf16, #tpu.memory_space<vmem>>, %arg2: memref<256x128xbf16, #tpu.memory_space<vmem>>, %arg3: memref<1x128xf32, #tpu.memory_space<vmem>>, %arg4: memref<128x128xbf16, #tpu.memory_space<vmem>>, %arg5: memref<1x128xf32, #tpu.memory_space<vmem>>, %arg6: memref<128x128xbf16, #tpu.memory_space<vmem>>, %arg7: memref<1x128xf32, #tpu.memory_space<vmem>>, %arg8: memref<128x128xbf16, #tpu.memory_space<vmem>>, %arg9: memref<1x128xf32, #tpu.memory_space<vmem>>, %arg10: memref<16x128xf32, #tpu.memory_space<vmem>>) attributes {dimension_semantics = [#tpu.dimension_semantics<parallel>], iteration_bounds = array<i64: 1>, scalar_prefetch = 0 : i64, scratch_operands = 0 : i64, tpu.core_type = #tpu.core_type<tc>, window_params = [{transform_indices = @transform_0, window_bounds = array<i64: 16, 256>}, {pipeline_mode = #tpu.pipeline_mode<synchronous>, transform_indices = @transform_1, window_bounds = array<i64: 256, 128>}, {pipeline_mode = #tpu.pipeline_mode<synchronous>, transform_indices = @transform_2, window_bounds = array<i64: 1, 128>}, {pipeline_mode = #tpu.pipeline_mode<synchronous>, transform_indices = @transform_3, window_bounds = array<i64: 128, 128>}, {pipeline_mode = #tpu.pipeline_mode<synchronous>, transform_indices = @transform_4, window_bounds = array<i64: 1, 128>}, {pipeline_mode = #tpu.pipeline_mode<synchronous>, transform_indices = @transform_5, window_bounds = array<i64: 128, 128>}, {pipeline_mode = #tpu.pipeline_mode<synchronous>, transform_indices = @transform_6, window_bounds = array<i64: 1, 128>}, {pipeline_mode = #tpu.pipeline_mode<synchronous>, transform_indices = @transform_7, window_bounds = array<i64: 128, 128>}, {pipeline_mode = #tpu.pipeline_mode<synchronous>, transform_indices = @transform_8, window_bounds = array<i64: 1, 128>}, {transform_indices = @transform_9, window_bounds = array<i64: 16, 128>}]} {
    %c0 = arith.constant 0 : index
    %c0_0 = arith.constant 0 : index
    %0 = vector.load %arg1[%c0, %c0_0] : memref<16x256xbf16, #tpu.memory_space<vmem>>, vector<16x256xbf16>
    %c0_1 = arith.constant 0 : index
    %c0_2 = arith.constant 0 : index
    %1 = vector.load %arg2[%c0_1, %c0_2] : memref<256x128xbf16, #tpu.memory_space<vmem>>, vector<256x128xbf16>
    %c0_3 = arith.constant 0 : index
    %c0_4 = arith.constant 0 : index
    %2 = vector.load %arg3[%c0_3, %c0_4] : memref<1x128xf32, #tpu.memory_space<vmem>>, vector<1x128xf32>
    %cst = arith.constant dense<0.000000e+00> : vector<16x128xf32>
    %3 = tpu.matmul %0, %1, %cst {dimension_numbers = #tpu.dot_dimension_numbers<[1], [0], [0], [1], [0, 0, 1, 1], [], []>} : vector<16x256xbf16>, vector<256x128xbf16>, vector<16x128xf32> -> vector<16x128xf32>
    %4 = vector.broadcast %2 : vector<1x128xf32> to vector<16x128xf32>
    %5 = arith.addf %3, %4 : vector<16x128xf32>
    %cst_5 = arith.constant 0.000000e+00 : f32
    %6 = vector.broadcast %cst_5 : f32 to vector<16x128xf32>
    %7 = arith.maximumf %5, %6 : vector<16x128xf32>
    %8 = arith.truncf %7 : vector<16x128xf32> to vector<16x128xbf16>
    %c0_6 = arith.constant 0 : index
    %c0_7 = arith.constant 0 : index
    %9 = vector.load %arg4[%c0_6, %c0_7] : memref<128x128xbf16, #tpu.memory_space<vmem>>, vector<128x128xbf16>
    %c0_8 = arith.constant 0 : index
    %c0_9 = arith.constant 0 : index
    %10 = vector.load %arg5[%c0_8, %c0_9] : memref<1x128xf32, #tpu.memory_space<vmem>>, vector<1x128xf32>
    %cst_10 = arith.constant dense<0.000000e+00> : vector<16x128xf32>
    %11 = tpu.matmul %8, %9, %cst_10 {dimension_numbers = #tpu.dot_dimension_numbers<[1], [0], [0], [1], [0, 0, 1, 1], [], []>} : vector<16x128xbf16>, vector<128x128xbf16>, vector<16x128xf32> -> vector<16x128xf32>
    %12 = vector.broadcast %10 : vector<1x128xf32> to vector<16x128xf32>
    %13 = arith.addf %11, %12 : vector<16x128xf32>
    %cst_11 = arith.constant 0.000000e+00 : f32
    %14 = vector.broadcast %cst_11 : f32 to vector<16x128xf32>
    %15 = arith.maximumf %13, %14 : vector<16x128xf32>
    %16 = arith.truncf %15 : vector<16x128xf32> to vector<16x128xbf16>
    %c0_12 = arith.constant 0 : index
    %c0_13 = arith.constant 0 : index
    %17 = vector.load %arg6[%c0_12, %c0_13] : memref<128x128xbf16, #tpu.memory_space<vmem>>, vector<128x128xbf16>
    %c0_14 = arith.constant 0 : index
    %c0_15 = arith.constant 0 : index
    %18 = vector.load %arg7[%c0_14, %c0_15] : memref<1x128xf32, #tpu.memory_space<vmem>>, vector<1x128xf32>
    %cst_16 = arith.constant dense<0.000000e+00> : vector<16x128xf32>
    %19 = tpu.matmul %16, %17, %cst_16 {dimension_numbers = #tpu.dot_dimension_numbers<[1], [0], [0], [1], [0, 0, 1, 1], [], []>} : vector<16x128xbf16>, vector<128x128xbf16>, vector<16x128xf32> -> vector<16x128xf32>
    %20 = vector.broadcast %18 : vector<1x128xf32> to vector<16x128xf32>
    %21 = arith.addf %19, %20 : vector<16x128xf32>
    %cst_17 = arith.constant 0.000000e+00 : f32
    %22 = vector.broadcast %cst_17 : f32 to vector<16x128xf32>
    %23 = arith.maximumf %21, %22 : vector<16x128xf32>
    %24 = arith.truncf %23 : vector<16x128xf32> to vector<16x128xbf16>
    %c0_18 = arith.constant 0 : index
    %c0_19 = arith.constant 0 : index
    %25 = vector.load %arg8[%c0_18, %c0_19] : memref<128x128xbf16, #tpu.memory_space<vmem>>, vector<128x128xbf16>
    %c0_20 = arith.constant 0 : index
    %c0_21 = arith.constant 0 : index
    %26 = vector.load %arg9[%c0_20, %c0_21] : memref<1x128xf32, #tpu.memory_space<vmem>>, vector<1x128xf32>
    %cst_22 = arith.constant dense<0.000000e+00> : vector<16x128xf32>
    %27 = tpu.matmul %24, %25, %cst_22 {dimension_numbers = #tpu.dot_dimension_numbers<[1], [0], [0], [1], [0, 0, 1, 1], [], []>} : vector<16x128xbf16>, vector<128x128xbf16>, vector<16x128xf32> -> vector<16x128xf32>
    %28 = vector.broadcast %26 : vector<1x128xf32> to vector<16x128xf32>
    %29 = arith.addf %27, %28 : vector<16x128xf32>
    %c0_23 = arith.constant 0 : index
    %c0_24 = arith.constant 0 : index
    %30 = vector.load %arg10[%c0_23, %c0_24] : memref<16x128xf32, #tpu.memory_space<vmem>>, vector<16x128xf32>
    tpu.vector_store %arg10[%c0_23, %c0_24], %29 {strides = array<i32>} : memref<16x128xf32, #tpu.memory_space<vmem>>, vector<16x128xf32>,
    return
  }
  func.func @transform_0(%arg0: i32) -> (i32, i32) {
    %c0_i32 = arith.constant 0 : i32
    %c0_i32_0 = arith.constant 0 : i32
    return %arg0, %c0_i32 : i32, i32
  }
  func.func @transform_1(%arg0: i32) -> (i32, i32) {
    %c0_i32 = arith.constant 0 : i32
    %c0_i32_0 = arith.constant 0 : i32
    %c0_i32_1 = arith.constant 0 : i32
    return %c0_i32, %c0_i32_0 : i32, i32
  }
  func.func @transform_2(%arg0: i32) -> (i32, i32) {
    %c0_i32 = arith.constant 0 : i32
    %c0_i32_0 = arith.constant 0 : i32
    %c0_i32_1 = arith.constant 0 : i32
    return %c0_i32, %c0_i32_0 : i32, i32
  }
  func.func @transform_3(%arg0: i32) -> (i32, i32) {
    %c0_i32 = arith.constant 0 : i32
    %c0_i32_0 = arith.constant 0 : i32
    %c0_i32_1 = arith.constant 0 : i32
    return %c0_i32, %c0_i32_0 : i32, i32
  }
  func.func @transform_4(%arg0: i32) -> (i32, i32) {
    %c0_i32 = arith.constant 0 : i32
    %c0_i32_0 = arith.constant 0 : i32
    %c0_i32_1 = arith.constant 0 : i32
    return %c0_i32, %c0_i32_0 : i32, i32
  }
  func.func @transform_5(%arg0: i32) -> (i32, i32) {
    %c0_i32 = arith.constant 0 : i32
    %c0_i32_0 = arith.constant 0 : i32
    %c0_i32_1 = arith.constant 0 : i32
    return %c0_i32, %c0_i32_0 : i32, i32
  }
  func.func @transform_6(%arg0: i32) -> (i32, i32) {
    %c0_i32 = arith.constant 0 : i32
    %c0_i32_0 = arith.constant 0 : i32
    %c0_i32_1 = arith.constant 0 : i32
    return %c0_i32, %c0_i32_0 : i32, i32
  }
  func.func @transform_7(%arg0: i32) -> (i32, i32) {
    %c0_i32 = arith.constant 0 : i32
    %c0_i32_0 = arith.constant 0 : i32
    %c0_i32_1 = arith.constant 0 : i32
    return %c0_i32, %c0_i32_0 : i32, i32
  }
  func.func @transform_8(%arg0: i32) -> (i32, i32) {
    %c0_i32 = arith.constant 0 : i32
    %c0_i32_0 = arith.constant 0 : i32
    %c0_i32_1 = arith.constant 0 : i32
    return %c0_i32, %c0_i32_0 : i32, i32
  }
  func.func @transform_9(%arg0: i32) -> (i32, i32) {
    %c0_i32 = arith.constant 0 : i32
    %c0_i32_0 = arith.constant 0 : i32
    return %arg0, %c0_i32 : i32, i32
  }
}

module attributes {stable_mosaic.version = 11 : i64} {
  func.func @_mlp_kernel(%arg0: i32, %arg1: memref<16x256xbf16, #tpu.memory_space<vmem>>, %arg2: memref<256x128xbf16, #tpu.memory_space<vmem>>, %arg3: memref<1x128xf32, #tpu.memory_space<vmem>>, %arg4: memref<128x128xbf16, #tpu.memory_space<vmem>>, %arg5: memref<1x128xf32, #tpu.memory_space<vmem>>, %arg6: memref<128x128xbf16, #tpu.memory_space<vmem>>, %arg7: memref<1x128xf32, #tpu.memory_space<vmem>>, %arg8: memref<128x128xbf16, #tpu.memory_space<vmem>>, %arg9: memref<1x128xf32, #tpu.memory_space<vmem>>, %arg10: memref<16x128xf32, #tpu.memory_space<vmem>>) attributes {dimension_semantics = [#tpu.dimension_semantics<parallel>], iteration_bounds = array<i64: 1>, scalar_prefetch = 0 : i64, scratch_operands = 0 : i64, tpu.core_type = #tpu.core_type<tc>, window_params = [{transform_indices = @transform_0, window_bounds = array<i64: 16, 256>}, {pipeline_mode = #tpu.pipeline_mode<synchronous>, transform_indices = @transform_1, window_bounds = array<i64: 256, 128>}, {pipeline_mode = #tpu.pipeline_mode<synchronous>, transform_indices = @transform_2, window_bounds = array<i64: 1, 128>}, {pipeline_mode = #tpu.pipeline_mode<synchronous>, transform_indices = @transform_3, window_bounds = array<i64: 128, 128>}, {pipeline_mode = #tpu.pipeline_mode<synchronous>, transform_indices = @transform_4, window_bounds = array<i64: 1, 128>}, {pipeline_mode = #tpu.pipeline_mode<synchronous>, transform_indices = @transform_5, window_bounds = array<i64: 128, 128>}, {pipeline_mode = #tpu.pipeline_mode<synchronous>, transform_indices = @transform_6, window_bounds = array<i64: 1, 128>}, {pipeline_mode = #tpu.pipeline_mode<synchronous>, transform_indices = @transform_7, window_bounds = array<i64: 128, 128>}, {pipeline_mode = #tpu.pipeline_mode<synchronous>, transform_indices = @transform_8, window_bounds = array<i64: 1, 128>}, {transform_indices = @transform_9, window_bounds = array<i64: 16, 128>}]} {
    %c0 = arith.constant 0 : index
    %c0_0 = arith.constant 0 : index
    %0 = vector.load %arg1[%c0, %c0_0] : memref<16x256xbf16, #tpu.memory_space<vmem>>, vector<16x256xbf16>
    %c0_1 = arith.constant 0 : index
    %c0_2 = arith.constant 0 : index
    %1 = vector.load %arg2[%c0_1, %c0_2] : memref<256x128xbf16, #tpu.memory_space<vmem>>, vector<256x128xbf16>
    %c0_3 = arith.constant 0 : index
    %c0_4 = arith.constant 0 : index
    %2 = vector.load %arg3[%c0_3, %c0_4] : memref<1x128xf32, #tpu.memory_space<vmem>>, vector<1x128xf32>
    %cst = arith.constant dense<0.000000e+00> : vector<16x128xf32>
    %3 = tpu.matmul %0, %1, %cst {dimension_numbers = #tpu.dot_dimension_numbers<[1], [0], [0], [1], [0, 0, 1, 1], [], []>} : vector<16x256xbf16>, vector<256x128xbf16>, vector<16x128xf32> -> vector<16x128xf32>
    %4 = vector.broadcast %2 : vector<1x128xf32> to vector<16x128xf32>
    %5 = arith.addf %3, %4 : vector<16x128xf32>
    %cst_5 = arith.constant 0.000000e+00 : f32
    %6 = vector.broadcast %cst_5 : f32 to vector<16x128xf32>
    %7 = arith.maximumf %5, %6 : vector<16x128xf32>
    %8 = arith.truncf %7 : vector<16x128xf32> to vector<16x128xbf16>
    %c0_6 = arith.constant 0 : index
    %c0_7 = arith.constant 0 : index
    %9 = vector.load %arg4[%c0_6, %c0_7] : memref<128x128xbf16, #tpu.memory_space<vmem>>, vector<128x128xbf16>
    %c0_8 = arith.constant 0 : index
    %c0_9 = arith.constant 0 : index
    %10 = vector.load %arg5[%c0_8, %c0_9] : memref<1x128xf32, #tpu.memory_space<vmem>>, vector<1x128xf32>
    %cst_10 = arith.constant dense<0.000000e+00> : vector<16x128xf32>
    %11 = tpu.matmul %8, %9, %cst_10 {dimension_numbers = #tpu.dot_dimension_numbers<[1], [0], [0], [1], [0, 0, 1, 1], [], []>} : vector<16x128xbf16>, vector<128x128xbf16>, vector<16x128xf32> -> vector<16x128xf32>
    %12 = vector.broadcast %10 : vector<1x128xf32> to vector<16x128xf32>
    %13 = arith.addf %11, %12 : vector<16x128xf32>
    %cst_11 = arith.constant 0.000000e+00 : f32
    %14 = vector.broadcast %cst_11 : f32 to vector<16x128xf32>
    %15 = arith.maximumf %13, %14 : vector<16x128xf32>
    %16 = arith.truncf %15 : vector<16x128xf32> to vector<16x128xbf16>
    %c0_12 = arith.constant 0 : index
    %c0_13 = arith.constant 0 : index
    %17 = vector.load %arg6[%c0_12, %c0_13] : memref<128x128xbf16, #tpu.memory_space<vmem>>, vector<128x128xbf16>
    %c0_14 = arith.constant 0 : index
    %c0_15 = arith.constant 0 : index
    %18 = vector.load %arg7[%c0_14, %c0_15] : memref<1x128xf32, #tpu.memory_space<vmem>>, vector<1x128xf32>
    %cst_16 = arith.constant dense<0.000000e+00> : vector<16x128xf32>
    %19 = tpu.matmul %16, %17, %cst_16 {dimension_numbers = #tpu.dot_dimension_numbers<[1], [0], [0], [1], [0, 0, 1, 1], [], []>} : vector<16x128xbf16>, vector<128x128xbf16>, vector<16x128xf32> -> vector<16x128xf32>
    %20 = vector.broadcast %18 : vector<1x128xf32> to vector<16x128xf32>
    %21 = arith.addf %19, %20 : vector<16x128xf32>
    %cst_17 = arith.constant 0.000000e+00 : f32
    %22 = vector.broadcast %cst_17 : f32 to vector<16x128xf32>
    %23 = arith.maximumf %21, %22 : vector<16x128xf32>
    %24 = arith.truncf %23 : vector<16x128xf32> to vector<16x128xbf16>
    %c0_18 = arith.constant 0 : index
    %c0_19 = arith.constant 0 : index
    %25 = vector.load %arg8[%c0_18, %c0_19] : memref<128x128xbf16, #tpu.memory_space<vmem>>, vector<128x128xbf16>
    %c0_20 = arith.constant 0 : index
    %c0_21 = arith.constant 0 : index
    %26 = vector.load %arg9[%c0_20, %c0_21] : memref<1x128xf32, #tpu.memory_space<vmem>>, vector<1x128xf32>
    %cst_22 = arith.constant dense<0.000000e+00> : vector<16x128xf32>
    %27 = tpu.matmul %24, %25, %cst_22 {dimension_numbers = #tpu.dot_dimension_numbers<[1], [0], [0], [1], [0, 0, 1, 1], [], []>} : vector<16x128xbf16>, vector<128x128xbf16>, vector<16x128xf32> -> vector<16x128xf32>
    %28 = vector.broadcast %26 : vector<1x128xf32> to vector<16x128xf32>
    %29 = arith.addf %27, %28 : vector<16x128xf32>
    %c0_23 = arith.constant 0 : index
    %c0_24 = arith.constant 0 : index
    %30 = vector.load %arg10[%c0_23, %c0_24] : memref<16x128xf32, #tpu.memory_space<vmem>>, vector<16x128xf32>
    tpu.vector_store %arg10[%c0_23, %c0_24], %29 {strides = array<i32>} : memref<16x128xf32, #tpu.memory_space<vmem>>, vector<16x128xf32>,
    return
  }
  func.func @transform_0(%arg0: i32) -> (i32, i32) {
    %c0_i32 = arith.constant 0 : i32
    %c0_i32_0 = arith.constant 0 : i32
    return %arg0, %c0_i32 : i32, i32
  }
  func.func @transform_1(%arg0: i32) -> (i32, i32) {
    %c0_i32 = arith.constant 0 : i32
    %c0_i32_0 = arith.constant 0 : i32
    %c0_i32_1 = arith.constant 0 : i32
    return %c0_i32, %c0_i32_0 : i32, i32
  }
  func.func @transform_2(%arg0: i32) -> (i32, i32) {
    %c0_i32 = arith.constant 0 : i32
    %c0_i32_0 = arith.constant 0 : i32
    %c0_i32_1 = arith.constant 0 : i32
    return %c0_i32, %c0_i32_0 : i32, i32
  }
  func.func @transform_3(%arg0: i32) -> (i32, i32) {
    %c0_i32 = arith.constant 0 : i32
    %c0_i32_0 = arith.constant 0 : i32
    %c0_i32_1 = arith.constant 0 : i32
    return %c0_i32, %c0_i32_0 : i32, i32
  }
  func.func @transform_4(%arg0: i32) -> (i32, i32) {
    %c0_i32 = arith.constant 0 : i32
    %c0_i32_0 = arith.constant 0 : i32
    %c0_i32_1 = arith.constant 0 : i32
    return %c0_i32, %c0_i32_0 : i32, i32
  }
  func.func @transform_5(%arg0: i32) -> (i32, i32) {
    %c0_i32 = arith.constant 0 : i32
    %c0_i32_0 = arith.constant 0 : i32
    %c0_i32_1 = arith.constant 0 : i32
    return %c0_i32, %c0_i32_0 : i32, i32
  }
  func.func @transform_6(%arg0: i32) -> (i32, i32) {
    %c0_i32 = arith.constant 0 : i32
    %c0_i32_0 = arith.constant 0 : i32
    %c0_i32_1 = arith.constant 0 : i32
    return %c0_i32, %c0_i32_0 : i32, i32
  }
  func.func @transform_7(%arg0: i32) -> (i32, i32) {
    %c0_i32 = arith.constant 0 : i32
    %c0_i32_0 = arith.constant 0 : i32
    %c0_i32_1 = arith.constant 0 : i32
    return %c0_i32, %c0_i32_0 : i32, i32
  }
  func.func @transform_8(%arg0: i32) -> (i32, i32) {
    %c0_i32 = arith.constant 0 : i32
    %c0_i32_0 = arith.constant 0 : i32
    %c0_i32_1 = arith.constant 0 : i32
    return %c0_i32, %c0_i32_0 : i32, i32
  }
  func.func @transform_9(%arg0: i32) -> (i32, i32) {
    %c0_i32 = arith.constant 0 : i32
    %c0_i32_0 = arith.constant 0 : i32
    return %arg0, %c0_i32 : i32, i32
  }
}

</mosaic_0001>

<bundles_post_ra>
// kernel: tpu_custom_call.1
= control target key start
LH: loop header
LB: loop body
LE: loop exit
PB: predicated region body
PF: predicated region fallthrough
CT: control target
= control target key end

     0   :  { %14 = vsyncpa [#allocation3], 0  ;;  %s1200_s0 = inlined_call_operand.hbm [shape: bf16[16,256], index: 0, kind: input, shape index: {}]   ;;  %s1201_s1 = inlined_call_operand.hbm [shape: bf16[256,128], index: 1, kind: input, shape index: {}]   ;;  %s1202_s2 = inlined_call_operand.vmem [shape: f32[1,128], index: 2, kind: input, shape index: {}]   ;;  %s1203_s3 = inlined_call_operand.hbm [shape: bf16[128,128], index: 3, kind: input, shape index: {}]   ;;  %s1204_s4 = inlined_call_operand.vmem [shape: f32[1,128], index: 4, kind: input, shape index: {}]   ;;  %s1205_s5 = inlined_call_operand.hbm [shape: bf16[128,128], index: 5, kind: input, shape index: {}]   ;;  %s1206_s6 = inlined_call_operand.vmem [shape: f32[1,128], index: 6, kind: input, shape index: {}]   ;;  %s1207_s7 = inlined_call_operand.hbm [shape: bf16[128,128], index: 7, kind: input, shape index: {}]   ;;  %s1208_s8 = inlined_call_operand.vmem [shape: f32[1,128], index: 8, kind: input, shape index: {}]   ;;  %s1209_s9 = inlined_call_operand.hbm [shape: f32[16,128], index: 9, kind: output, shape index: {}]  }
   0x1   :  { %15 = vsyncpa [#allocation6], 0 }
   0x2   :  { %16 = vsyncpa [#allocation9], 0 }
   0x3   :  { %17 = vsyncpa [#allocation4], 0  ;;  %s1006_s30 = smov [#allocation5]   ;;  %s866_s13 = scalar_lea.hbm %s1201_s1, 2048 }
   0x4   :  { %s35_s10 = sshll.u32 %s1006_s30, 4  ;;  %p867_p0 = scmp.ne.s32.totalorder %s1201_s1, %s866_s13  ;;  %s36_s10 = int_to_ptr.vmem [resolvable:$true] %s35_s10 }
   0x5   :  { %p870_p1 = scmp.lt.u32.totalorder %s866_s13, %s1201_s1 }
   0x7   :  { %p872_p2 = pnand %p870_p1, %p867_p0 }
   0x9   :  { %875 = shalt.err (!%p872_p2)
}
   0xa   :  { %s876_s18 = scalar_lea.vmem %s36_s10, 2048  ;;  %p881_p4 = scmp.lt.s32.totalorder %s36_s10, %s36_s10 }
   0xb   :  { %p877_p3 = scmp.ne.s32.totalorder %s36_s10, %s876_s18  ;;  %p882_p5 = scmp.lt.s32.totalorder %s876_s18, %s876_s18 }
   0xd   :  { %p883_p6 = por %p882_p5, %p881_p4 }
   0xf   :  { %p884_p7 = pnand %p883_p6, %p877_p3 }
  0x11   :  { %887 = shalt.err (!%p884_p7)
}
  0x12   :  { %s1007_s19 = smov 64   ;;  %s1008_s20 = smov 4  }
  0x13   :  { %41 = dma.hbm_to_vmem [thread:$0]  %s1201_s1, 2048, %s36_s10, [#allocation6], %s1007_s19, %s1007_s19, %s1008_s20  }
  0x14   :  { %s1009_s23 = smov [#allocation8]   ;;  %s1010_s25 = smov [#allocation2]  }
  0x15   :  { %s63_s24 = sshll.u32 %s1009_s23, 4  ;;  %s23_s26 = sshll.u32 %s1010_s25, 4  ;;  %s64_s24 = int_to_ptr.vmem [resolvable:$true] %s63_s24  ;;  %s24_s26 = int_to_ptr.vmem [resolvable:$true] %s23_s26 }
  0x16   :  { %s888_s29 = scalar_lea.hbm %s1205_s5, 1024 }
  0x17   :  { %p889_p8 = scmp.ne.s32.totalorder %s1205_s5, %s888_s29  ;;  %p892_p9 = scmp.lt.u32.totalorder %s888_s29, %s1205_s5 }
  0x19   :  { %p894_p10 = pnand %p892_p9, %p889_p8 }
  0x1b   :  { %897 = shalt.err (!%p894_p10)
}
  0x1c   :  { %s898_s1 = scalar_lea.vmem %s64_s24, 1024  ;;  %p903_p12 = scmp.lt.s32.totalorder %s64_s24, %s64_s24 }
  0x1d   :  { %p899_p11 = scmp.ne.s32.totalorder %s64_s24, %s898_s1  ;;  %p904_p13 = scmp.lt.s32.totalorder %s898_s1, %s898_s1 }
  0x1f   :  { %p905_p0 = por %p904_p13, %p903_p12 }
  0x21   :  { %p906_p1 = pnand %p905_p0, %p899_p11 }
  0x23   :  { %909 = shalt.err (!%p906_p1)
}
  0x24   :  { %69 = dma.hbm_to_vmem [thread:$0]  %s1205_s5, 1024, %s64_s24, [#allocation9], %s1007_s19, %s1007_s19, %s1008_s20  }
  0x25   :  { %s910_s17 = scalar_lea.hbm %s1200_s0, 256 }
  0x26   :  { %p911_p2 = scmp.ne.s32.totalorder %s1200_s0, %s910_s17  ;;  %p914_p3 = scmp.lt.u32.totalorder %s910_s17, %s1200_s0 }
  0x28   :  { %p916_p4 = pnand %p914_p3, %p911_p2 }
  0x2a   :  { %919 = shalt.err (!%p916_p4)
}
  0x2b   :  { %s920_s25 = scalar_lea.vmem %s24_s26, 256  ;;  %p925_p6 = scmp.lt.s32.totalorder %s24_s26, %s24_s26 }
  0x2c   :  { %p921_p5 = scmp.ne.s32.totalorder %s24_s26, %s920_s25  ;;  %p926_p7 = scmp.lt.s32.totalorder %s920_s25, %s920_s25 }
  0x2e   :  { %p927_p8 = por %p926_p7, %p925_p6 }
  0x30   :  { %p928_p9 = pnand %p927_p8, %p921_p5 }
  0x32   :  { %931 = shalt.err (!%p928_p9)
}
  0x33   :  { %s1011_s5 = smov 128   ;;  %s1012_s24 = smov 8  }
  0x34   :  { %29 = dma.hbm_to_vmem [thread:$0]  %s1200_s0, 256, %s24_s26, [#allocation3], %s1011_s5, %s1011_s5, %s1012_s24  }
  0x35   :  { %s1013_s29 = smov [#allocation7]   ;;  %s1014_s11 = smov [#allocation10]  }
  0x36   :  { %s49_s30 = sshll.u32 %s1013_s29, 4  ;;  %s77_s12 = sshll.u32 %s1014_s11, 4  ;;  %s50_s30 = int_to_ptr.vmem [resolvable:$true] %s49_s30  ;;  %s78_s12 = int_to_ptr.vmem [resolvable:$true] %s77_s12 }
  0x37   :  { %s932_s10 = scalar_lea.hbm %s1203_s3, 1024 }
  0x38   :  { %p933_p10 = scmp.ne.s32.totalorder %s1203_s3, %s932_s10  ;;  %p936_p11 = scmp.lt.u32.totalorder %s932_s10, %s1203_s3 }
  0x3a   :  { %p938_p12 = pnand %p936_p11, %p933_p10 }
  0x3c   :  { %941 = shalt.err (!%p938_p12)
}
  0x3d   :  { %s942_s0 = scalar_lea.vmem %s50_s30, 1024  ;;  %p947_p0 = scmp.lt.s32.totalorder %s50_s30, %s50_s30 }
  0x3e   :  { %p943_p13 = scmp.ne.s32.totalorder %s50_s30, %s942_s0  ;;  %p948_p1 = scmp.lt.s32.totalorder %s942_s0, %s942_s0 }
  0x40   :  { %p949_p2 = por %p948_p1, %p947_p0 }
  0x42   :  { %p950_p3 = pnand %p949_p2, %p943_p13 }
  0x44   :  { %953 = shalt.err (!%p950_p3)
}
  0x45   :  { %55 = dma.hbm_to_vmem [thread:$0]  %s1203_s3, 1024, %s50_s30, [#allocation6], %s1007_s19, %s1007_s19, %s1008_s20  }
  0x46   :  { %s954_s23 = scalar_lea.hbm %s1207_s7, 1024 }
  0x47   :  { %p955_p4 = scmp.ne.s32.totalorder %s1207_s7, %s954_s23  ;;  %p958_p5 = scmp.lt.u32.totalorder %s954_s23, %s1207_s7 }
  0x49   :  { %p960_p6 = pnand %p958_p5, %p955_p4 }
  0x4b   :  { %963 = shalt.err (!%p960_p6)
}
  0x4c   :  { %s964_s11 = scalar_lea.vmem %s78_s12, 1024  ;;  %p969_p8 = scmp.lt.s32.totalorder %s78_s12, %s78_s12 }
  0x4d   :  { %p965_p7 = scmp.ne.s32.totalorder %s78_s12, %s964_s11  ;;  %p970_p9 = scmp.lt.s32.totalorder %s964_s11, %s964_s11 }
  0x4f   :  { %p971_p10 = por %p970_p9, %p969_p8 }
  0x51   :  { %p972_p11 = pnand %p971_p10, %p965_p7 }
  0x53   :  { %975 = shalt.err (!%p972_p11)
}
  0x54   :  { %83 = dma.hbm_to_vmem [thread:$0]  %s1207_s7, 1024, %s78_s12, [#allocation9], %s1007_s19, %s1007_s19, %s1008_s20  }
  0x55   :  { %998 = dma.done.wait [#allocation3], 256  }
  0x56   :  { %999 = vsyncadd [#allocation3], 4294967040 }
  0x57   :  { %1000 = dma.done.wait [#allocation6], 3072  }
  0x58   :  { %1001 = vsyncadd [#allocation6], 4294964224 }
  0x59   :  { %1002 = dma.done.wait [#allocation9], 2048  }
  0x5a   :  { %1003 = vsyncadd [#allocation9], 4294965248  ;;  %v1015_v0 = vmov 0.0   ;;  %v823_v1 = vld [vmem:[#allocation5 + $0x40] sm:$0xff]   ;;  %v825_v3 = vld [vmem:[#allocation5 + $0x48] sm:$0xff]   ;;  %vm1016_vm0 = vmmov 0  }
  0x5b   :  { %751 = vmatprep.subr.bf16.mxu1 %v1015_v0  ;;  %v824_v2 = vld [vmem:[#allocation5] sm:$0xff]   ;;  %702 = vmatprep.subr.bf16.mxu0 %v823_v1  ;;  %v826_v4 = vld [vmem:[#allocation5 + $0x8] sm:$0xff]   ;;  %v827_v5 = vld [vmem:[#allocation5 + $0x50] sm:$0xff]   ;;  %s1017_s10 = smov [#allocation11]  }
  0x5c   :  { %703 = vmatpush3.bf16.msra.mxu0 %v824_v2  ;;  %v828_v6 = vld [vmem:[#allocation5 + $0x10] sm:$0xff]   ;;  %v829_v7 = vld [vmem:[#allocation5 + $0x58] sm:$0xff]   ;;  %v831_v9 = vld [vmem:[#allocation5 + $0x60] sm:$0xff]   ;;  %767 = vmatprep.mubr.msk.bf16.mxu1 %vm1016_vm0, %v1015_v0  ;;  %s642_s14 = sshll.u32 %s1017_s10, 4  ;;  %s643_s14 = int_to_ptr.vmem [resolvable:$true] %s642_s14 }
  0x5d   :  { %704 = vmatprep.subr.bf16.mxu0 %v825_v3  ;;  %v830_v8 = vld [vmem:[#allocation5 + $0x18] sm:$0xff]   ;;  %v832_v10 = vld [vmem:[#allocation5 + $0x20] sm:$0xff]   ;;  %v833_v11 = vld [vmem:[#allocation5 + $0x68] sm:$0xff]   ;;  %p981_p13 = scmp.lt.s32.totalorder %s643_s14, %s643_s14 }
  0x5e   :  { %v834_v12 = vld [vmem:[#allocation5 + $0x28] sm:$0xff]   ;;  %v841_v13 = vld [vmem:[#allocation2 + $0x4] ss:$8 sps:$4 sm:$0xff]   ;;  %v842_v14 = vld [vmem:[#allocation7] sm:$0xff]  }
  0x5f   :  { %v835_v15 = vld [vmem:[#allocation5 + $0x70] sm:$0xff]   ;;  %281 = vmatprep.mubr.bf16.mxu0 %v841_v13  ;;  %752 = vmatpush3.bf16.msra.mxu1 %v842_v14  ;;  %v843_v16 = vld [vmem:[#allocation7 + $0x8] sm:$0xff]   ;;  %v837_v18 = vld [vmem:[#allocation5 + $0x78] sm:$0xff]  }
  0x60   :  { %705 = vmatpush3.bf16.msra.mxu0 %v826_v4  ;;  %v836_v17 = vld [vmem:[#allocation5 + $0x30] sm:$0xff]   ;;  %753 = vmatprep.subr.bf16.mxu1 %v1015_v0  ;;  %v838_v20 = vld [vmem:[#allocation5 + $0x38] sm:$0xff]   ;;  %v846_v23 = vld [vmem:[#allocation7 + $0x20] sm:$0xff]  }
  0x61   :  { %706 = vmatprep.subr.bf16.mxu0 %v827_v5  ;;  %v844_v19 = vld [vmem:[#allocation7 + $0x10] sm:$0xff]   ;;  %v845_v21 = vld [vmem:[#allocation7 + $0x18] sm:$0xff]   ;;  %v847_v24 = vld [vmem:[#allocation7 + $0x28] sm:$0xff]  }
  0x62   :  { %v839_v22 = vld [vmem:[#allocation2] ss:$8 sps:$4 sm:$0xff]   ;;  %v850_v27 = vld [vmem:[#allocation8] sm:$0xff]   ;;  %v851_v28 = vld [vmem:[#allocation8 + $0x8] sm:$0xff]  }
  0x63   :  { %754 = vmatpush3.bf16.msra.mxu1 %v843_v16  ;;  %v848_v25 = vld [vmem:[#allocation7 + $0x30] sm:$0xff]   ;;  %v849_v26 = vld [vmem:[#allocation7 + $0x38] sm:$0xff]   ;;  %v854_v31 = vld [vmem:[#allocation8 + $0x20] sm:$0xff]  }
  0x64   :  { %707 = vmatpush3.bf16.msra.mxu0 %v828_v6  ;;  %755 = vmatprep.subr.bf16.mxu1 %v1015_v0  ;;  %v852_v29 = vld [vmem:[#allocation8 + $0x10] sm:$0xff]   ;;  %v853_v30 = vld [vmem:[#allocation8 + $0x18] sm:$0xff]   ;;  %v855_v32 = vld [vmem:[#allocation8 + $0x28] sm:$0xff]  }
  0x65   :  { %708 = vmatprep.subr.bf16.mxu0 %v829_v7  ;;  %v656_v34 = vld [vmem:[%s1202_s2] ss:$0 sm:$0xff]  ;;  %v857_v46 = vld [vmem:[#allocation8 + $0x38] sm:$0xff]   ;;  %v858_v47 = vld [vmem:[#allocation10] sm:$0xff]  }
  0x66   :  { %v856_v45 = vld [vmem:[#allocation8 + $0x30] sm:$0xff]   ;;  %v859_v48 = vld [vmem:[#allocation10 + $0x8] sm:$0xff]   ;;  %v861_v50 = vld [vmem:[#allocation10 + $0x18] sm:$0xff]  }
  0x67   :  { %756 = vmatpush3.bf16.msra.mxu1 %v844_v19  ;;  %v860_v49 = vld [vmem:[#allocation10 + $0x10] sm:$0xff]   ;;  %v862_v51 = vld [vmem:[#allocation10 + $0x20] sm:$0xff]   ;;  %v863_v52 = vld [vmem:[#allocation10 + $0x28] sm:$0xff]  }
  0x68   :  { %709 = vmatpush3.bf16.msra.mxu0 %v830_v8  ;;  %757 = vmatprep.subr.bf16.mxu1 %v1015_v0  ;;  %v675_v53 = vld [vmem:[%s1204_s4] ss:$0 sm:$0xff]  ;;  %v865_v1 = vld [vmem:[#allocation10 + $0x38] sm:$0xff]  }
  0x69   :  { %710 = vmatprep.subr.bf16.mxu0 %v831_v9  ;;  %v864_v63 = vld [vmem:[#allocation10 + $0x30] sm:$0xff]  }
  0x6a   :  { %v684_v2 = vld [vmem:[%s1206_s6] ss:$0 sm:$0xff]  ;;  %s976_s6 = scalar_lea.vmem %s643_s14, 256 }
  0x6b   :  { %758 = vmatpush3.bf16.msra.mxu1 %v845_v21  ;;  %p977_p12 = scmp.ne.s32.totalorder %s643_s14, %s976_s6  ;;  %p982_p0 = scmp.lt.s32.totalorder %s976_s6, %s976_s6 }
  0x6c   :  { %711 = vmatpush3.bf16.msra.mxu0 %v832_v10  ;;  %759 = vmatprep.subr.bf16.mxu1 %v1015_v0 }
  0x6d   :  { %712 = vmatprep.subr.bf16.mxu0 %v833_v11  ;;  %p983_p1 = por %p982_p0, %p981_p13 }
  0x6f   :  { %760 = vmatpush3.bf16.msra.mxu1 %v846_v23  ;;  %p984_p2 = pnand %p983_p1, %p977_p12 }
  0x70   :  { %713 = vmatpush3.bf16.msra.mxu0 %v834_v12  ;;  %761 = vmatprep.subr.bf16.mxu1 %v1015_v0 }
  0x71   :  { %714 = vmatprep.subr.bf16.mxu0 %v835_v15 }
  0x73   :  { %762 = vmatpush3.bf16.msra.mxu1 %v847_v24 }
  0x74   :  { %715 = vmatpush3.bf16.msra.mxu0 %v836_v17  ;;  %763 = vmatprep.subr.bf16.mxu1 %v1015_v0 }
  0x75   :  { %716 = vmatprep.subr.bf16.mxu0 %v837_v18 }
  0x77   :  { %764 = vmatpush3.bf16.msra.mxu1 %v848_v25 }
  0x78   :  { %717 = vmatpush3.bf16.msra.mxu0 %v838_v20  ;;  %765 = vmatprep.subr.bf16.mxu1 %v1015_v0 }
  0x79   :  { %771 = vmatprep.subr.bf16.mxu0 %v1015_v0 }
  0x7b   :  { %282 = vmatmul.mubr.bf16.vlgmr.msra.gmra.mrb[0].mxu0 %v839_v22  ;;  %766 = vmatpush3.bf16.msra.mxu1 %v849_v26 }
  0x7c   :  { %787 = vmatprep.mubr.msk.bf16.mxu0 %vm1016_vm0, %v1015_v0  ;;  %791 = vmatprep.subr.bf16.mxu1 %v1015_v0 }
  0x7d   :  { %772 = vmatpush3.bf16.msra.mxu0 %v850_v27 }
  0x7e   :  { %773 = vmatprep.subr.bf16.mxu0 %v1015_v0 }
  0x81   :  { %774 = vmatpush3.bf16.msra.mxu0 %v851_v28 }
  0x82   :  { %775 = vmatprep.subr.bf16.mxu0 %v1015_v0 }
  0x85   :  { %776 = vmatpush3.bf16.msra.mxu0 %v852_v29 }
  0x86   :  { %777 = vmatprep.subr.bf16.mxu0 %v1015_v0 }
  0x89   :  { %778 = vmatpush3.bf16.msra.mxu0 %v853_v30 }
  0x8a   :  { %779 = vmatprep.subr.bf16.mxu0 %v1015_v0 }
  0x8d   :  { %780 = vmatpush3.bf16.msra.mxu0 %v854_v31 }
  0x8e   :  { %781 = vmatprep.subr.bf16.mxu0 %v1015_v0 }
  0x91   :  { %782 = vmatpush3.bf16.msra.mxu0 %v855_v32 }
  0x92   :  { %783 = vmatprep.subr.bf16.mxu0 %v1015_v0 }
  0x95   :  { %784 = vmatpush3.bf16.msra.mxu0 %v856_v45 }
  0x96   :  { %785 = vmatprep.subr.bf16.mxu0 %v1015_v0 }
  0x99   :  { %786 = vmatpush3.bf16.msra.mxu0 %v857_v46 }
 0x14e   :  { %v718_v33 = vpop.f32.mrb[0].mxu0 }
 0x14f   :  { %v719_v35 = vpop.f32.mrb[1].mxu0 }
 0x150   :  { %v720_v36 = vadd.f32 %v719_v35, %v718_v33  ;;  %v721_v37 = vpop.f32.mrb[2].mxu0 }
 0x151   :  { %v722_v38 = vpop.f32.mrb[3].mxu0 }
 0x152   :  { %v284_v39 = vadd.f32 %v720_v36, %v656_v34  ;;  %v723_v40 = vadd.f32 %v722_v38, %v721_v37 }
 0x154   :  { %v287_v41 = vadd.f32 %v723_v40, %v656_v34  ;;  %v290_v42 = vmax.f32 %v284_v39, 0.0 }
 0x156   :  { %v291_v43 = vmax.f32 %v287_v41, 0.0 }
 0x158   :  { %v292_v44 = vpack.c.bf16 %v291_v43, %v290_v42 }
 0x15a   :  { %768 = vmatmul.mubr.bf16.vlgmr.msra.gmra.mrb[0].mxu1 %v292_v44 }
 0x15b   :  { %807 = vmatprep.mubr.msk.bf16.mxu1 %vm1016_vm0, %v1015_v0  ;;  %792 = vmatpush3.bf16.msra.mxu1 %v858_v47 }
 0x15c   :  { %793 = vmatprep.subr.bf16.mxu1 %v1015_v0 }
 0x15f   :  { %794 = vmatpush3.bf16.msra.mxu1 %v859_v48 }
 0x160   :  { %795 = vmatprep.subr.bf16.mxu1 %v1015_v0 }
 0x163   :  { %796 = vmatpush3.bf16.msra.mxu1 %v860_v49 }
 0x164   :  { %797 = vmatprep.subr.bf16.mxu1 %v1015_v0 }
 0x167   :  { %798 = vmatpush3.bf16.msra.mxu1 %v861_v50 }
 0x168   :  { %799 = vmatprep.subr.bf16.mxu1 %v1015_v0 }
 0x16b   :  { %800 = vmatpush3.bf16.msra.mxu1 %v862_v51 }
 0x16c   :  { %801 = vmatprep.subr.bf16.mxu1 %v1015_v0 }
 0x16f   :  { %802 = vmatpush3.bf16.msra.mxu1 %v863_v52 }
 0x170   :  { %803 = vmatprep.subr.bf16.mxu1 %v1015_v0 }
 0x173   :  { %804 = vmatpush3.bf16.msra.mxu1 %v864_v63 }
 0x174   :  { %805 = vmatprep.subr.bf16.mxu1 %v1015_v0  ;;  %v693_v0 = vld [vmem:[%s1208_s8] ss:$0 sm:$0xff] }
 0x177   :  { %806 = vmatpush3.bf16.msra.mxu1 %v865_v1 }
 0x22d   :  { %v398_v54 = vpop.f32.mrb[0].mxu1 }
 0x22e   :  { %v399_v55 = vadd.f32 %v675_v53, %v398_v54  ;;  %v769_v56 = vpop.f32.mrb[1].mxu1 }
 0x22f   :  { %v401_v57 = vpop.f32.mrb[2].mxu1 }
 0x230   :  { %v402_v58 = vadd.f32 %v675_v53, %v401_v57  ;;  %v770_v59 = vpop.f32.mrb[3].mxu1  ;;  %v405_v60 = vmax.f32 %v399_v55, 0.0 }
 0x232   :  { %v406_v61 = vmax.f32 %v402_v58, 0.0 }
 0x234   :  { %v407_v62 = vpack.c.bf16 %v406_v61, %v405_v60 }
 0x236   :  { %788 = vmatmul.mubr.bf16.vlgmr.msra.gmra.mrb[4].mxu0 %v407_v62 }
 0x309   :  { %v513_v3 = vpop.f32.mrb[4].mxu0 }
 0x30a   :  { %v514_v4 = vadd.f32 %v684_v2, %v513_v3  ;;  %v789_v5 = vpop.f32.mrb[5].mxu0 }
 0x30b   :  { %v516_v6 = vpop.f32.mrb[6].mxu0 }
 0x30c   :  { %v517_v7 = vadd.f32 %v684_v2, %v516_v6  ;;  %v790_v8 = vpop.f32.mrb[7].mxu0  ;;  %v520_v9 = vmax.f32 %v514_v4, 0.0 }
 0x30e   :  { %v521_v10 = vmax.f32 %v517_v7, 0.0 }
 0x310   :  { %v522_v11 = vpack.c.bf16 %v521_v10, %v520_v9 }
 0x312   :  { %808 = vmatmul.mubr.bf16.vlgmr.msra.gmra.mrb[4].mxu1 %v522_v11 }
 0x3e5   :  { %v628_v12 = vpop.f32.mrb[4].mxu1 }
 0x3e6   :  { %v629_v13 = vadd.f32 %v693_v0, %v628_v12  ;;  %v809_v14 = vpop.f32.mrb[5].mxu1 }
 0x3e7   :  { %v631_v15 = vpop.f32.mrb[6].mxu1 }
 0x3e8   :  { %635 = vst [vmem:[#allocation11] sm:$0xff] %v629_v13  ;;  %v632_v16 = vadd.f32 %v693_v0, %v631_v15  ;;  %v810_v17 = vpop.f32.mrb[7].mxu1 }
 0x3ea   :  { %636 = vst [vmem:[#allocation11 + $0x8] sm:$0xff] %v632_v16 }
 0x3eb   :  { %987 = shalt.err (!%p984_p2)
}
 0x3ec   :  { %s988_s16 = scalar_lea.hbm %s1209_s9, 256 }
 0x3ed   :  { %p989_p3 = scmp.ne.s32.totalorder %s1209_s9, %s988_s16  ;;  %p992_p4 = scmp.lt.u32.totalorder %s988_s16, %s1209_s9 }
 0x3ef   :  { %p994_p5 = pnand %p992_p4, %p989_p3 }
 0x3f1   :  { %997 = shalt.err (!%p994_p5)
}
 0x3f2   :  { %648 = dma.vmem_to_hbm [thread:$0]  %s643_s14, 256, %s1209_s9, [#allocation4], %s1011_s5, %s1011_s5, %s1012_s24  }
 0x3f3   :  { %1004 = dma.done.wait [#allocation4], 256  }
 0x3f4   :  { %1005 = vsyncadd [#allocation4], 4294967040 }
 0x3f5   :  { %652 = vsyncpa [#allocation3], 1 }
 0x3f6   :  { %653 = vsyncpa [#allocation6], 1 }
 0x3f7   :  { %654 = vsyncpa [#allocation9], 1 }
 0x3f8   :  { %655 = vsyncpa [#allocation4], 1 }

// kernel: tpu_custom_call.1
= control target key start
LH: loop header
LB: loop body
LE: loop exit
PB: predicated region body
PF: predicated region fallthrough
CT: control target
= control target key end

     0   :  { %14 = vsyncpa [#allocation3], 0  ;;  %s1200_s0 = inlined_call_operand.hbm [shape: bf16[16,256], index: 0, kind: input, shape index: {}]   ;;  %s1201_s1 = inlined_call_operand.hbm [shape: bf16[256,128], index: 1, kind: input, shape index: {}]   ;;  %s1202_s2 = inlined_call_operand.vmem [shape: f32[1,128], index: 2, kind: input, shape index: {}]   ;;  %s1203_s3 = inlined_call_operand.hbm [shape: bf16[128,128], index: 3, kind: input, shape index: {}]   ;;  %s1204_s4 = inlined_call_operand.vmem [shape: f32[1,128], index: 4, kind: input, shape index: {}]   ;;  %s1205_s5 = inlined_call_operand.hbm [shape: bf16[128,128], index: 5, kind: input, shape index: {}]   ;;  %s1206_s6 = inlined_call_operand.vmem [shape: f32[1,128], index: 6, kind: input, shape index: {}]   ;;  %s1207_s7 = inlined_call_operand.hbm [shape: bf16[128,128], index: 7, kind: input, shape index: {}]   ;;  %s1208_s8 = inlined_call_operand.vmem [shape: f32[1,128], index: 8, kind: input, shape index: {}]   ;;  %s1209_s9 = inlined_call_operand.hbm [shape: f32[16,128], index: 9, kind: output, shape index: {}]  }
   0x1   :  { %15 = vsyncpa [#allocation6], 0 }
   0x2   :  { %16 = vsyncpa [#allocation9], 0 }
   0x3   :  { %17 = vsyncpa [#allocation4], 0  ;;  %s1006_s30 = smov [#allocation5]   ;;  %s866_s13 = scalar_lea.hbm %s1201_s1, 2048 }
   0x4   :  { %s35_s10 = sshll.u32 %s1006_s30, 4  ;;  %p867_p0 = scmp.ne.s32.totalorder %s1201_s1, %s866_s13  ;;  %s36_s10 = int_to_ptr.vmem [resolvable:$true] %s35_s10 }
   0x5   :  { %p870_p1 = scmp.lt.u32.totalorder %s866_s13, %s1201_s1 }
   0x7   :  { %p872_p2 = pnand %p870_p1, %p867_p0 }
   0x9   :  { %875 = shalt.err (!%p872_p2)
}
   0xa   :  { %s876_s18 = scalar_lea.vmem %s36_s10, 2048  ;;  %p881_p4 = scmp.lt.s32.totalorder %s36_s10, %s36_s10 }
   0xb   :  { %p877_p3 = scmp.ne.s32.totalorder %s36_s10, %s876_s18  ;;  %p882_p5 = scmp.lt.s32.totalorder %s876_s18, %s876_s18 }
   0xd   :  { %p883_p6 = por %p882_p5, %p881_p4 }
   0xf   :  { %p884_p7 = pnand %p883_p6, %p877_p3 }
  0x11   :  { %887 = shalt.err (!%p884_p7)
}
  0x12   :  { %s1007_s19 = smov 64   ;;  %s1008_s20 = smov 4  }
  0x13   :  { %41 = dma.hbm_to_vmem [thread:$0]  %s1201_s1, 2048, %s36_s10, [#allocation6], %s1007_s19, %s1007_s19, %s1008_s20  }
  0x14   :  { %s1009_s23 = smov [#allocation8]   ;;  %s1010_s25 = smov [#allocation2]  }
  0x15   :  { %s63_s24 = sshll.u32 %s1009_s23, 4  ;;  %s23_s26 = sshll.u32 %s1010_s25, 4  ;;  %s64_s24 = int_to_ptr.vmem [resolvable:$true] %s63_s24  ;;  %s24_s26 = int_to_ptr.vmem [resolvable:$true] %s23_s26 }
  0x16   :  { %s888_s29 = scalar_lea.hbm %s1205_s5, 1024 }
  0x17   :  { %p889_p8 = scmp.ne.s32.totalorder %s1205_s5, %s888_s29  ;;  %p892_p9 = scmp.lt.u32.totalorder %s888_s29, %s1205_s5 }
  0x19   :  { %p894_p10 = pnand %p892_p9, %p889_p8 }
  0x1b   :  { %897 = shalt.err (!%p894_p10)
}
  0x1c   :  { %s898_s1 = scalar_lea.vmem %s64_s24, 1024  ;;  %p903_p12 = scmp.lt.s32.totalorder %s64_s24, %s64_s24 }
  0x1d   :  { %p899_p11 = scmp.ne.s32.totalorder %s64_s24, %s898_s1  ;;  %p904_p13 = scmp.lt.s32.totalorder %s898_s1, %s898_s1 }
  0x1f   :  { %p905_p0 = por %p904_p13, %p903_p12 }
  0x21   :  { %p906_p1 = pnand %p905_p0, %p899_p11 }
  0x23   :  { %909 = shalt.err (!%p906_p1)
}
  0x24   :  { %69 = dma.hbm_to_vmem [thread:$0]  %s1205_s5, 1024, %s64_s24, [#allocation9], %s1007_s19, %s1007_s19, %s1008_s20  }
  0x25   :  { %s910_s17 = scalar_lea.hbm %s1200_s0, 256 }
  0x26   :  { %p911_p2 = scmp.ne.s32.totalorder %s1200_s0, %s910_s17  ;;  %p914_p3 = scmp.lt.u32.totalorder %s910_s17, %s1200_s0 }
  0x28   :  { %p916_p4 = pnand %p914_p3, %p911_p2 }
  0x2a   :  { %919 = shalt.err (!%p916_p4)
}
  0x2b   :  { %s920_s25 = scalar_lea.vmem %s24_s26, 256  ;;  %p925_p6 = scmp.lt.s32.totalorder %s24_s26, %s24_s26 }
  0x2c   :  { %p921_p5 = scmp.ne.s32.totalorder %s24_s26, %s920_s25  ;;  %p926_p7 = scmp.lt.s32.totalorder %s920_s25, %s920_s25 }
  0x2e   :  { %p927_p8 = por %p926_p7, %p925_p6 }
  0x30   :  { %p928_p9 = pnand %p927_p8, %p921_p5 }
  0x32   :  { %931 = shalt.err (!%p928_p9)
}
  0x33   :  { %s1011_s5 = smov 128   ;;  %s1012_s24 = smov 8  }
  0x34   :  { %29 = dma.hbm_to_vmem [thread:$0]  %s1200_s0, 256, %s24_s26, [#allocation3], %s1011_s5, %s1011_s5, %s1012_s24  }
  0x35   :  { %s1013_s29 = smov [#allocation7]   ;;  %s1014_s11 = smov [#allocation10]  }
  0x36   :  { %s49_s30 = sshll.u32 %s1013_s29, 4  ;;  %s77_s12 = sshll.u32 %s1014_s11, 4  ;;  %s50_s30 = int_to_ptr.vmem [resolvable:$true] %s49_s30  ;;  %s78_s12 = int_to_ptr.vmem [resolvable:$true] %s77_s12 }
  0x37   :  { %s932_s10 = scalar_lea.hbm %s1203_s3, 1024 }
  0x38   :  { %p933_p10 = scmp.ne.s32.totalorder %s1203_s3, %s932_s10  ;;  %p936_p11 = scmp.lt.u32.totalorder %s932_s10, %s1203_s3 }
  0x3a   :  { %p938_p12 = pnand %p936_p11, %p933_p10 }
  0x3c   :  { %941 = shalt.err (!%p938_p12)
}
  0x3d   :  { %s942_s0 = scalar_lea.vmem %s50_s30, 1024  ;;  %p947_p0 = scmp.lt.s32.totalorder %s50_s30, %s50_s30 }
  0x3e   :  { %p943_p13 = scmp.ne.s32.totalorder %s50_s30, %s942_s0  ;;  %p948_p1 = scmp.lt.s32.totalorder %s942_s0, %s942_s0 }
  0x40   :  { %p949_p2 = por %p948_p1, %p947_p0 }
  0x42   :  { %p950_p3 = pnand %p949_p2, %p943_p13 }
  0x44   :  { %953 = shalt.err (!%p950_p3)
}
  0x45   :  { %55 = dma.hbm_to_vmem [thread:$0]  %s1203_s3, 1024, %s50_s30, [#allocation6], %s1007_s19, %s1007_s19, %s1008_s20  }
  0x46   :  { %s954_s23 = scalar_lea.hbm %s1207_s7, 1024 }
  0x47   :  { %p955_p4 = scmp.ne.s32.totalorder %s1207_s7, %s954_s23  ;;  %p958_p5 = scmp.lt.u32.totalorder %s954_s23, %s1207_s7 }
  0x49   :  { %p960_p6 = pnand %p958_p5, %p955_p4 }
  0x4b   :  { %963 = shalt.err (!%p960_p6)
}
  0x4c   :  { %s964_s11 = scalar_lea.vmem %s78_s12, 1024  ;;  %p969_p8 = scmp.lt.s32.totalorder %s78_s12, %s78_s12 }
  0x4d   :  { %p965_p7 = scmp.ne.s32.totalorder %s78_s12, %s964_s11  ;;  %p970_p9 = scmp.lt.s32.totalorder %s964_s11, %s964_s11 }
  0x4f   :  { %p971_p10 = por %p970_p9, %p969_p8 }
  0x51   :  { %p972_p11 = pnand %p971_p10, %p965_p7 }
  0x53   :  { %975 = shalt.err (!%p972_p11)
}
  0x54   :  { %83 = dma.hbm_to_vmem [thread:$0]  %s1207_s7, 1024, %s78_s12, [#allocation9], %s1007_s19, %s1007_s19, %s1008_s20  }
  0x55   :  { %998 = dma.done.wait [#allocation3], 256  }
  0x56   :  { %999 = vsyncadd [#allocation3], 4294967040 }
  0x57   :  { %1000 = dma.done.wait [#allocation6], 3072  }
  0x58   :  { %1001 = vsyncadd [#allocation6], 4294964224 }
  0x59   :  { %1002 = dma.done.wait [#allocation9], 2048  }
  0x5a   :  { %1003 = vsyncadd [#allocation9], 4294965248  ;;  %v1015_v0 = vmov 0.0   ;;  %v823_v1 = vld [vmem:[#allocation5 + $0x40] sm:$0xff]   ;;  %v825_v3 = vld [vmem:[#allocation5 + $0x48] sm:$0xff]   ;;  %vm1016_vm0 = vmmov 0  }
  0x5b   :  { %751 = vmatprep.subr.bf16.mxu1 %v1015_v0  ;;  %v824_v2 = vld [vmem:[#allocation5] sm:$0xff]   ;;  %702 = vmatprep.subr.bf16.mxu0 %v823_v1  ;;  %v826_v4 = vld [vmem:[#allocation5 + $0x8] sm:$0xff]   ;;  %v827_v5 = vld [vmem:[#allocation5 + $0x50] sm:$0xff]   ;;  %s1017_s10 = smov [#allocation11]  }
  0x5c   :  { %703 = vmatpush3.bf16.msra.mxu0 %v824_v2  ;;  %v828_v6 = vld [vmem:[#allocation5 + $0x10] sm:$0xff]   ;;  %v829_v7 = vld [vmem:[#allocation5 + $0x58] sm:$0xff]   ;;  %v831_v9 = vld [vmem:[#allocation5 + $0x60] sm:$0xff]   ;;  %767 = vmatprep.mubr.msk.bf16.mxu1 %vm1016_vm0, %v1015_v0  ;;  %s642_s14 = sshll.u32 %s1017_s10, 4  ;;  %s643_s14 = int_to_ptr.vmem [resolvable:$true] %s642_s14 }
  0x5d   :  { %704 = vmatprep.subr.bf16.mxu0 %v825_v3  ;;  %v830_v8 = vld [vmem:[#allocation5 + $0x18] sm:$0xff]   ;;  %v832_v10 = vld [vmem:[#allocation5 + $0x20] sm:$0xff]   ;;  %v833_v11 = vld [vmem:[#allocation5 + $0x68] sm:$0xff]   ;;  %p981_p13 = scmp.lt.s32.totalorder %s643_s14, %s643_s14 }
  0x5e   :  { %v834_v12 = vld [vmem:[#allocation5 + $0x28] sm:$0xff]   ;;  %v841_v13 = vld [vmem:[#allocation2 + $0x4] ss:$8 sps:$4 sm:$0xff]   ;;  %v842_v14 = vld [vmem:[#allocation7] sm:$0xff]  }
  0x5f   :  { %v835_v15 = vld [vmem:[#allocation5 + $0x70] sm:$0xff]   ;;  %281 = vmatprep.mubr.bf16.mxu0 %v841_v13  ;;  %752 = vmatpush3.bf16.msra.mxu1 %v842_v14  ;;  %v843_v16 = vld [vmem:[#allocation7 + $0x8] sm:$0xff]   ;;  %v837_v18 = vld [vmem:[#allocation5 + $0x78] sm:$0xff]  }
  0x60   :  { %705 = vmatpush3.bf16.msra.mxu0 %v826_v4  ;;  %v836_v17 = vld [vmem:[#allocation5 + $0x30] sm:$0xff]   ;;  %753 = vmatprep.subr.bf16.mxu1 %v1015_v0  ;;  %v838_v20 = vld [vmem:[#allocation5 + $0x38] sm:$0xff]   ;;  %v846_v23 = vld [vmem:[#allocation7 + $0x20] sm:$0xff]  }
  0x61   :  { %706 = vmatprep.subr.bf16.mxu0 %v827_v5  ;;  %v844_v19 = vld [vmem:[#allocation7 + $0x10] sm:$0xff]   ;;  %v845_v21 = vld [vmem:[#allocation7 + $0x18] sm:$0xff]   ;;  %v847_v24 = vld [vmem:[#allocation7 + $0x28] sm:$0xff]  }
  0x62   :  { %v839_v22 = vld [vmem:[#allocation2] ss:$8 sps:$4 sm:$0xff]   ;;  %v850_v27 = vld [vmem:[#allocation8] sm:$0xff]   ;;  %v851_v28 = vld [vmem:[#allocation8 + $0x8] sm:$0xff]  }
  0x63   :  { %754 = vmatpush3.bf16.msra.mxu1 %v843_v16  ;;  %v848_v25 = vld [vmem:[#allocation7 + $0x30] sm:$0xff]   ;;  %v849_v26 = vld [vmem:[#allocation7 + $0x38] sm:$0xff]   ;;  %v854_v31 = vld [vmem:[#allocation8 + $0x20] sm:$0xff]  }
  0x64   :  { %707 = vmatpush3.bf16.msra.mxu0 %v828_v6  ;;  %755 = vmatprep.subr.bf16.mxu1 %v1015_v0  ;;  %v852_v29 = vld [vmem:[#allocation8 + $0x10] sm:$0xff]   ;;  %v853_v30 = vld [vmem:[#allocation8 + $0x18] sm:$0xff]   ;;  %v855_v32 = vld [vmem:[#allocation8 + $0x28] sm:$0xff]  }
  0x65   :  { %708 = vmatprep.subr.bf16.mxu0 %v829_v7  ;;  %v656_v34 = vld [vmem:[%s1202_s2] ss:$0 sm:$0xff]  ;;  %v857_v46 = vld [vmem:[#allocation8 + $0x38] sm:$0xff]   ;;  %v858_v47 = vld [vmem:[#allocation10] sm:$0xff]  }
  0x66   :  { %v856_v45 = vld [vmem:[#allocation8 + $0x30] sm:$0xff]   ;;  %v859_v48 = vld [vmem:[#allocation10 + $0x8] sm:$0xff]   ;;  %v861_v50 = vld [vmem:[#allocation10 + $0x18] sm:$0xff]  }
  0x67   :  { %756 = vmatpush3.bf16.msra.mxu1 %v844_v19  ;;  %v860_v49 = vld [vmem:[#allocation10 + $0x10] sm:$0xff]   ;;  %v862_v51 = vld [vmem:[#allocation10 + $0x20] sm:$0xff]   ;;  %v863_v52 = vld [vmem:[#allocation10 + $0x28] sm:$0xff]  }
  0x68   :  { %709 = vmatpush3.bf16.msra.mxu0 %v830_v8  ;;  %757 = vmatprep.subr.bf16.mxu1 %v1015_v0  ;;  %v675_v53 = vld [vmem:[%s1204_s4] ss:$0 sm:$0xff]  ;;  %v865_v1 = vld [vmem:[#allocation10 + $0x38] sm:$0xff]  }
  0x69   :  { %710 = vmatprep.subr.bf16.mxu0 %v831_v9  ;;  %v864_v63 = vld [vmem:[#allocation10 + $0x30] sm:$0xff]  }
  0x6a   :  { %v684_v2 = vld [vmem:[%s1206_s6] ss:$0 sm:$0xff]  ;;  %s976_s6 = scalar_lea.vmem %s643_s14, 256 }
  0x6b   :  { %758 = vmatpush3.bf16.msra.mxu1 %v845_v21  ;;  %p977_p12 = scmp.ne.s32.totalorder %s643_s14, %s976_s6  ;;  %p982_p0 = scmp.lt.s32.totalorder %s976_s6, %s976_s6 }
  0x6c   :  { %711 = vmatpush3.bf16.msra.mxu0 %v832_v10  ;;  %759 = vmatprep.subr.bf16.mxu1 %v1015_v0 }
  0x6d   :  { %712 = vmatprep.subr.bf16.mxu0 %v833_v11  ;;  %p983_p1 = por %p982_p0, %p981_p13 }
  0x6f   :  { %760 = vmatpush3.bf16.msra.mxu1 %v846_v23  ;;  %p984_p2 = pnand %p983_p1, %p977_p12 }
  0x70   :  { %713 = vmatpush3.bf16.msra.mxu0 %v834_v12  ;;  %761 = vmatprep.subr.bf16.mxu1 %v1015_v0 }
  0x71   :  { %714 = vmatprep.subr.bf16.mxu0 %v835_v15 }
  0x73   :  { %762 = vmatpush3.bf16.msra.mxu1 %v847_v24 }
  0x74   :  { %715 = vmatpush3.bf16.msra.mxu0 %v836_v17  ;;  %763 = vmatprep.subr.bf16.mxu1 %v1015_v0 }
  0x75   :  { %716 = vmatprep.subr.bf16.mxu0 %v837_v18 }
  0x77   :  { %764 = vmatpush3.bf16.msra.mxu1 %v848_v25 }
  0x78   :  { %717 = vmatpush3.bf16.msra.mxu0 %v838_v20  ;;  %765 = vmatprep.subr.bf16.mxu1 %v1015_v0 }
  0x79   :  { %771 = vmatprep.subr.bf16.mxu0 %v1015_v0 }
  0x7b   :  { %282 = vmatmul.mubr.bf16.vlgmr.msra.gmra.mrb[0].mxu0 %v839_v22  ;;  %766 = vmatpush3.bf16.msra.mxu1 %v849_v26 }
  0x7c   :  { %787 = vmatprep.mubr.msk.bf16.mxu0 %vm1016_vm0, %v1015_v0  ;;  %791 = vmatprep.subr.bf16.mxu1 %v1015_v0 }
  0x7d   :  { %772 = vmatpush3.bf16.msra.mxu0 %v850_v27 }
  0x7e   :  { %773 = vmatprep.subr.bf16.mxu0 %v1015_v0 }
  0x81   :  { %774 = vmatpush3.bf16.msra.mxu0 %v851_v28 }
  0x82   :  { %775 = vmatprep.subr.bf16.mxu0 %v1015_v0 }
  0x85   :  { %776 = vmatpush3.bf16.msra.mxu0 %v852_v29 }
  0x86   :  { %777 = vmatprep.subr.bf16.mxu0 %v1015_v0 }
  0x89   :  { %778 = vmatpush3.bf16.msra.mxu0 %v853_v30 }
  0x8a   :  { %779 = vmatprep.subr.bf16.mxu0 %v1015_v0 }
  0x8d   :  { %780 = vmatpush3.bf16.msra.mxu0 %v854_v31 }
  0x8e   :  { %781 = vmatprep.subr.bf16.mxu0 %v1015_v0 }
  0x91   :  { %782 = vmatpush3.bf16.msra.mxu0 %v855_v32 }
  0x92   :  { %783 = vmatprep.subr.bf16.mxu0 %v1015_v0 }
  0x95   :  { %784 = vmatpush3.bf16.msra.mxu0 %v856_v45 }
  0x96   :  { %785 = vmatprep.subr.bf16.mxu0 %v1015_v0 }
  0x99   :  { %786 = vmatpush3.bf16.msra.mxu0 %v857_v46 }
 0x14e   :  { %v718_v33 = vpop.f32.mrb[0].mxu0 }
 0x14f   :  { %v719_v35 = vpop.f32.mrb[1].mxu0 }
 0x150   :  { %v720_v36 = vadd.f32 %v719_v35, %v718_v33  ;;  %v721_v37 = vpop.f32.mrb[2].mxu0 }
 0x151   :  { %v722_v38 = vpop.f32.mrb[3].mxu0 }
 0x152   :  { %v284_v39 = vadd.f32 %v720_v36, %v656_v34  ;;  %v723_v40 = vadd.f32 %v722_v38, %v721_v37 }
 0x154   :  { %v287_v41 = vadd.f32 %v723_v40, %v656_v34  ;;  %v290_v42 = vmax.f32 %v284_v39, 0.0 }
 0x156   :  { %v291_v43 = vmax.f32 %v287_v41, 0.0 }
 0x158   :  { %v292_v44 = vpack.c.bf16 %v291_v43, %v290_v42 }
 0x15a   :  { %768 = vmatmul.mubr.bf16.vlgmr.msra.gmra.mrb[0].mxu1 %v292_v44 }
 0x15b   :  { %807 = vmatprep.mubr.msk.bf16.mxu1 %vm1016_vm0, %v1015_v0  ;;  %792 = vmatpush3.bf16.msra.mxu1 %v858_v47 }
 0x15c   :  { %793 = vmatprep.subr.bf16.mxu1 %v1015_v0 }
 0x15f   :  { %794 = vmatpush3.bf16.msra.mxu1 %v859_v48 }
 0x160   :  { %795 = vmatprep.subr.bf16.mxu1 %v1015_v0 }
 0x163   :  { %796 = vmatpush3.bf16.msra.mxu1 %v860_v49 }
 0x164   :  { %797 = vmatprep.subr.bf16.mxu1 %v1015_v0 }
 0x167   :  { %798 = vmatpush3.bf16.msra.mxu1 %v861_v50 }
 0x168   :  { %799 = vmatprep.subr.bf16.mxu1 %v1015_v0 }
 0x16b   :  { %800 = vmatpush3.bf16.msra.mxu1 %v862_v51 }
 0x16c   :  { %801 = vmatprep.subr.bf16.mxu1 %v1015_v0 }
 0x16f   :  { %802 = vmatpush3.bf16.msra.mxu1 %v863_v52 }
 0x170   :  { %803 = vmatprep.subr.bf16.mxu1 %v1015_v0 }
 0x173   :  { %804 = vmatpush3.bf16.msra.mxu1 %v864_v63 }
 0x174   :  { %805 = vmatprep.subr.bf16.mxu1 %v1015_v0  ;;  %v693_v0 = vld [vmem:[%s1208_s8] ss:$0 sm:$0xff] }
 0x177   :  { %806 = vmatpush3.bf16.msra.mxu1 %v865_v1 }
 0x22d   :  { %v398_v54 = vpop.f32.mrb[0].mxu1 }
 0x22e   :  { %v399_v55 = vadd.f32 %v675_v53, %v398_v54  ;;  %v769_v56 = vpop.f32.mrb[1].mxu1 }
 0x22f   :  { %v401_v57 = vpop.f32.mrb[2].mxu1 }
 0x230   :  { %v402_v58 = vadd.f32 %v675_v53, %v401_v57  ;;  %v770_v59 = vpop.f32.mrb[3].mxu1  ;;  %v405_v60 = vmax.f32 %v399_v55, 0.0 }
 0x232   :  { %v406_v61 = vmax.f32 %v402_v58, 0.0 }
 0x234   :  { %v407_v62 = vpack.c.bf16 %v406_v61, %v405_v60 }
 0x236   :  { %788 = vmatmul.mubr.bf16.vlgmr.msra.gmra.mrb[4].mxu0 %v407_v62 }
 0x309   :  { %v513_v3 = vpop.f32.mrb[4].mxu0 }
 0x30a   :  { %v514_v4 = vadd.f32 %v684_v2, %v513_v3  ;;  %v789_v5 = vpop.f32.mrb[5].mxu0 }
 0x30b   :  { %v516_v6 = vpop.f32.mrb[6].mxu0 }
 0x30c   :  { %v517_v7 = vadd.f32 %v684_v2, %v516_v6  ;;  %v790_v8 = vpop.f32.mrb[7].mxu0  ;;  %v520_v9 = vmax.f32 %v514_v4, 0.0 }
 0x30e   :  { %v521_v10 = vmax.f32 %v517_v7, 0.0 }
 0x310   :  { %v522_v11 = vpack.c.bf16 %v521_v10, %v520_v9 }
 0x312   :  { %808 = vmatmul.mubr.bf16.vlgmr.msra.gmra.mrb[4].mxu1 %v522_v11 }
 0x3e5   :  { %v628_v12 = vpop.f32.mrb[4].mxu1 }
 0x3e6   :  { %v629_v13 = vadd.f32 %v693_v0, %v628_v12  ;;  %v809_v14 = vpop.f32.mrb[5].mxu1 }
 0x3e7   :  { %v631_v15 = vpop.f32.mrb[6].mxu1 }
 0x3e8   :  { %635 = vst [vmem:[#allocation11] sm:$0xff] %v629_v13  ;;  %v632_v16 = vadd.f32 %v693_v0, %v631_v15  ;;  %v810_v17 = vpop.f32.mrb[7].mxu1 }
 0x3ea   :  { %636 = vst [vmem:[#allocation11 + $0x8] sm:$0xff] %v632_v16 }
 0x3eb   :  { %987 = shalt.err (!%p984_p2)
}
 0x3ec   :  { %s988_s16 = scalar_lea.hbm %s1209_s9, 256 }
 0x3ed   :  { %p989_p3 = scmp.ne.s32.totalorder %s1209_s9, %s988_s16  ;;  %p992_p4 = scmp.lt.u32.totalorder %s988_s16, %s1209_s9 }
 0x3ef   :  { %p994_p5 = pnand %p992_p4, %p989_p3 }
 0x3f1   :  { %997 = shalt.err (!%p994_p5)
}
 0x3f2   :  { %648 = dma.vmem_to_hbm [thread:$0]  %s643_s14, 256, %s1209_s9, [#allocation4], %s1011_s5, %s1011_s5, %s1012_s24  }
 0x3f3   :  { %1004 = dma.done.wait [#allocation4], 256  }
 0x3f4   :  { %1005 = vsyncadd [#allocation4], 4294967040 }
 0x3f5   :  { %652 = vsyncpa [#allocation3], 1 }
 0x3f6   :  { %653 = vsyncpa [#allocation6], 1 }
 0x3f7   :  { %654 = vsyncpa [#allocation9], 1 }
 0x3f8   :  { %655 = vsyncpa [#allocation4], 1 }

</bundles_post_ra>
